<compile_context>
chip_gen: v6e
topology: v6e:2x2x1
jax: 0.10.0
libtpu: 0.0.40
codegen_flags: <defaults>
</compile_context>

<pallas_src>
import functools

import jax
import jax.numpy as jnp
from jax import lax
from jax.experimental import pallas as pl
from jax.experimental.pallas import tpu as pltpu

# ---- config (mirrors config_obj.rnn_config) ---------------------------------
NUM_EMBEDDINGS = 100
EMBEDDING_DIM  = 16          # == rnn input_dim
HIDDEN_SIZE    = 32
FC1_OUT        = 256
NUM_CLASSES    = 3

EMB_PAD = 128                # one-hot lane width (>= NUM_EMBEDDINGS, lane-dense)
OUT_PAD = 128                # classifier output lanes padded 3 -> 128


# ---- Pallas kernel: fused embedding + RNNCell recurrence + fc1/relu/fc2 ------
def rnn_fc_kernel(tok_ref, embwih_ref, whh_ref, brnn_ref,
                  w1_ref, b1_ref, w2_ref, b2_ref, out_ref,
                  *, seq_len, batch):
    SB = seq_len * batch
    NE = embwih_ref.shape[0]                 # 128 (row-padded table)
    H  = whh_ref.shape[0]

    # Fused embedding lookup + input projection, hoisted out of the recurrence:
    # one_hot(tokens) @ (embedding @ W_ih^T) + (b_ih + b_hh)
    # -> single (SB, 128) x (128, H) MXU matmul instead of a gather + per-step dot.
    tok    = tok_ref[...]                                            # (SB, 1) int32
    lanes  = lax.broadcasted_iota(jnp.int32, (SB, NE), 1)
    onehot = (tok == lanes).astype(jnp.float32)                      # (SB, NE)
    pre_x  = (jnp.dot(onehot, embwih_ref[...],
                      preferred_element_type=jnp.float32)
              + brnn_ref[...])                                       # (SB, H)

    # Serial recurrence: only h @ W_hh + tanh left on the dependency chain.
    # Fully unrolled (seq_len static & tiny) so the scheduler sees every step.
    whh = whh_ref[...]                                               # load once
    h = jnp.zeros((batch, H), jnp.float32)                           # h0 = zeros (nn.RNN default)
    for t in range(seq_len):                                         # static unroll
        h = jnp.tanh(pre_x[t * batch:(t + 1) * batch, :]
                     + jnp.dot(h, whh, preferred_element_type=jnp.float32))

    # Classifier head: fc1 -> ReLU -> fc2 (output lane-padded to 128).
    z1 = jnp.maximum(
        jnp.dot(h, w1_ref[...], preferred_element_type=jnp.float32) + b1_ref[...],
        0.0)
    out_ref[...] = (jnp.dot(z1, w2_ref[...],
                            preferred_element_type=jnp.float32) + b2_ref[...])


# ---- wrapper -----------------------------------------------------------------
def rnn_forward(x_tokens, params):
    S, B = x_tokens.shape        # reference conflates dim0 as batch & seq => S == B

    # Fold embedding @ W_ih^T into one gather-then-project table (linear, exact),
    # pad rows to 128 so the in-kernel one-hot is lane-dense.
    emb_wih = params["embedding"] @ params["w_ih"].T                  # (100, H)
    emb_wih = jnp.pad(emb_wih, ((0, EMB_PAD - NUM_EMBEDDINGS), (0, 0)))

    whh_t = params["w_hh"].T                                          # (H, H)
    b_rnn = (params["b_ih"] + params["b_hh"]).reshape(1, -1)          # (1, H)
    w1_t  = params["fc1_w"].T                                         # (H, 256)
    b1    = params["fc1_b"].reshape(1, -1)                            # (1, 256)
    w2_t  = jnp.pad(params["fc2_w"].T,                                # (256, 128)
                    ((0, 0), (0, OUT_PAD - NUM_CLASSES)))
    b2    = jnp.pad(params["fc2_b"].reshape(1, -1),                   # (1, 128)
                    ((0, 0), (0, OUT_PAD - NUM_CLASSES)))

    tok = x_tokens.reshape(S * B, 1).astype(jnp.int32)                # (S*B, 1)

    vmem = pl.BlockSpec(memory_space=pltpu.MemorySpace.VMEM)
    out_padded = pl.pallas_call(
        functools.partial(rnn_fc_kernel, seq_len=S, batch=B),
        out_shape=jax.ShapeDtypeStruct((B, OUT_PAD), jnp.float32),
        in_specs=[vmem] * 8,
        out_specs=vmem,
    )(tok, emb_wih, whh_t, b_rnn, w1_t, b1, w2_t, b2)
    return out_padded[:, :NUM_CLASSES]                                # (B, 3)


# ---- deterministic parameter init (matches __init__ shapes) -------------------
def init_params(key):
    ks = jax.random.split(key, 8)
    k_rnn = 1.0 / jnp.sqrt(HIDDEN_SIZE)
    k_fc1 = 1.0 / jnp.sqrt(HIDDEN_SIZE)
    k_fc2 = 1.0 / jnp.sqrt(FC1_OUT)
    u = lambda k, shape, b: jax.random.uniform(k, shape, jnp.float32, -b, b)
    return {
        "embedding": jax.random.normal(ks[0], (NUM_EMBEDDINGS, EMBEDDING_DIM),
                                       jnp.float32),
        "w_ih":  u(ks[1], (HIDDEN_SIZE, EMBEDDING_DIM), k_rnn),
        "w_hh":  u(ks[2], (HIDDEN_SIZE, HIDDEN_SIZE),   k_rnn),
        "b_ih":  u(ks[3], (HIDDEN_SIZE,),               k_rnn),
        "b_hh":  u(ks[4], (HIDDEN_SIZE,),               k_rnn),
        "fc1_w": u(ks[5], (FC1_OUT, HIDDEN_SIZE),       k_fc1),
        "fc1_b": u(ks[5], (FC1_OUT,),                   k_fc1),
        "fc2_w": u(ks[6], (NUM_CLASSES, FC1_OUT),       k_fc2),
        "fc2_b": u(ks[7], (NUM_CLASSES,),               k_fc2),
    }


if __name__ == "__main__":
    key = jax.random.PRNGKey(0)
    k_tok, k_par = jax.random.split(key)
    # d0 == d1 required by the reference code's seq-vs-batch conflation.
    x_tokens = jax.random.randint(k_tok, (8, 8), 0, NUM_EMBEDDINGS, dtype=jnp.int32)
    params = init_params(k_par)

    out = rnn_forward(x_tokens, params)
    jax.block_until_ready(out)
    assert out.shape == (8, NUM_CLASSES) and out.dtype == jnp.float32
    print("KERNEL_OK")
</pallas_src>

<mosaic_0001>
module attributes {stable_mosaic.version = 11 : i64} {
  func.func @rnn_fc_kernel(%arg0: memref<64x1xi32, #tpu.memory_space<vmem>>, %arg1: memref<128x32xf32, #tpu.memory_space<vmem>>, %arg2: memref<32x32xf32, #tpu.memory_space<vmem>>, %arg3: memref<1x32xf32, #tpu.memory_space<vmem>>, %arg4: memref<32x256xf32, #tpu.memory_space<vmem>>, %arg5: memref<1x256xf32, #tpu.memory_space<vmem>>, %arg6: memref<256x128xf32, #tpu.memory_space<vmem>>, %arg7: memref<1x128xf32, #tpu.memory_space<vmem>>, %arg8: memref<8x128xf32, #tpu.memory_space<vmem>>) attributes {dimension_semantics = [], scalar_prefetch = 0 : i64, scratch_operands = 0 : i64, tpu.core_type = #tpu.core_type<tc>} {
    %c0 = arith.constant 0 : index
    %c0_0 = arith.constant 0 : index
    %0 = vector.load %arg0[%c0, %c0_0] : memref<64x1xi32, #tpu.memory_space<vmem>>, vector<64x1xi32>
    %1 = tpu.iota {dimensions = array<i32: 1>} : vector<64x128xi32>
    %2 = vector.broadcast %0 : vector<64x1xi32> to vector<64x128xi32>
    %3 = arith.cmpi eq, %2, %1 : vector<64x128xi32>
    %4 = arith.extui %3 : vector<64x128xi1> to vector<64x128xi32>
    %5 = arith.sitofp %4 : vector<64x128xi32> to vector<64x128xf32>
    %c0_1 = arith.constant 0 : index
    %c0_2 = arith.constant 0 : index
    %6 = vector.load %arg1[%c0_1, %c0_2] : memref<128x32xf32, #tpu.memory_space<vmem>>, vector<128x32xf32>
    %cst = arith.constant dense<0.000000e+00> : vector<64x32xf32>
    %7 = tpu.matmul %5, %6, %cst {dimension_numbers = #tpu.dot_dimension_numbers<[1], [0], [0], [1], [0, 0, 1, 1], [], []>} : vector<64x128xf32>, vector<128x32xf32>, vector<64x32xf32> -> vector<64x32xf32>
    %c0_3 = arith.constant 0 : index
    %c0_4 = arith.constant 0 : index
    %8 = vector.load %arg3[%c0_3, %c0_4] : memref<1x32xf32, #tpu.memory_space<vmem>>, vector<1x32xf32>
    %9 = vector.broadcast %8 : vector<1x32xf32> to vector<64x32xf32>
    %10 = arith.addf %7, %9 : vector<64x32xf32>
    %c0_5 = arith.constant 0 : index
    %c0_6 = arith.constant 0 : index
    %11 = vector.load %arg2[%c0_5, %c0_6] : memref<32x32xf32, #tpu.memory_space<vmem>>, vector<32x32xf32>
    %cst_7 = arith.constant 0.000000e+00 : f32
    %12 = vector.broadcast %cst_7 : f32 to vector<8x32xf32>
    %13 = vector.extract_strided_slice %10 {offsets = [0, 0], sizes = [8, 32], strides = [1, 1]} : vector<64x32xf32> to vector<8x32xf32>
    %cst_8 = arith.constant dense<0.000000e+00> : vector<8x32xf32>
    %14 = tpu.matmul %12, %11, %cst_8 {dimension_numbers = #tpu.dot_dimension_numbers<[1], [0], [0], [1], [0, 0, 1, 1], [], []>} : vector<8x32xf32>, vector<32x32xf32>, vector<8x32xf32> -> vector<8x32xf32>
    %15 = arith.addf %13, %14 : vector<8x32xf32>
    %16 = math.tanh %15 : vector<8x32xf32>
    %17 = vector.extract_strided_slice %10 {offsets = [8, 0], sizes = [8, 32], strides = [1, 1]} : vector<64x32xf32> to vector<8x32xf32>
    %cst_9 = arith.constant dense<0.000000e+00> : vector<8x32xf32>
    %18 = tpu.matmul %16, %11, %cst_9 {dimension_numbers = #tpu.dot_dimension_numbers<[1], [0], [0], [1], [0, 0, 1, 1], [], []>} : vector<8x32xf32>, vector<32x32xf32>, vector<8x32xf32> -> vector<8x32xf32>
    %19 = arith.addf %17, %18 : vector<8x32xf32>
    %20 = math.tanh %19 : vector<8x32xf32>
    %21 = vector.extract_strided_slice %10 {offsets = [16, 0], sizes = [8, 32], strides = [1, 1]} : vector<64x32xf32> to vector<8x32xf32>
    %cst_10 = arith.constant dense<0.000000e+00> : vector<8x32xf32>
    %22 = tpu.matmul %20, %11, %cst_10 {dimension_numbers = #tpu.dot_dimension_numbers<[1], [0], [0], [1], [0, 0, 1, 1], [], []>} : vector<8x32xf32>, vector<32x32xf32>, vector<8x32xf32> -> vector<8x32xf32>
    %23 = arith.addf %21, %22 : vector<8x32xf32>
    %24 = math.tanh %23 : vector<8x32xf32>
    %25 = vector.extract_strided_slice %10 {offsets = [24, 0], sizes = [8, 32], strides = [1, 1]} : vector<64x32xf32> to vector<8x32xf32>
    %cst_11 = arith.constant dense<0.000000e+00> : vector<8x32xf32>
    %26 = tpu.matmul %24, %11, %cst_11 {dimension_numbers = #tpu.dot_dimension_numbers<[1], [0], [0], [1], [0, 0, 1, 1], [], []>} : vector<8x32xf32>, vector<32x32xf32>, vector<8x32xf32> -> vector<8x32xf32>
    %27 = arith.addf %25, %26 : vector<8x32xf32>
    %28 = math.tanh %27 : vector<8x32xf32>
    %29 = vector.extract_strided_slice %10 {offsets = [32, 0], sizes = [8, 32], strides = [1, 1]} : vector<64x32xf32> to vector<8x32xf32>
    %cst_12 = arith.constant dense<0.000000e+00> : vector<8x32xf32>
    %30 = tpu.matmul %28, %11, %cst_12 {dimension_numbers = #tpu.dot_dimension_numbers<[1], [0], [0], [1], [0, 0, 1, 1], [], []>} : vector<8x32xf32>, vector<32x32xf32>, vector<8x32xf32> -> vector<8x32xf32>
    %31 = arith.addf %29, %30 : vector<8x32xf32>
    %32 = math.tanh %31 : vector<8x32xf32>
    %33 = vector.extract_strided_slice %10 {offsets = [40, 0], sizes = [8, 32], strides = [1, 1]} : vector<64x32xf32> to vector<8x32xf32>
    %cst_13 = arith.constant dense<0.000000e+00> : vector<8x32xf32>
    %34 = tpu.matmul %32, %11, %cst_13 {dimension_numbers = #tpu.dot_dimension_numbers<[1], [0], [0], [1], [0, 0, 1, 1], [], []>} : vector<8x32xf32>, vector<32x32xf32>, vector<8x32xf32> -> vector<8x32xf32>
    %35 = arith.addf %33, %34 : vector<8x32xf32>
    %36 = math.tanh %35 : vector<8x32xf32>
    %37 = vector.extract_strided_slice %10 {offsets = [48, 0], sizes = [8, 32], strides = [1, 1]} : vector<64x32xf32> to vector<8x32xf32>
    %cst_14 = arith.constant dense<0.000000e+00> : vector<8x32xf32>
    %38 = tpu.matmul %36, %11, %cst_14 {dimension_numbers = #tpu.dot_dimension_numbers<[1], [0], [0], [1], [0, 0, 1, 1], [], []>} : vector<8x32xf32>, vector<32x32xf32>, vector<8x32xf32> -> vector<8x32xf32>
    %39 = arith.addf %37, %38 : vector<8x32xf32>
    %40 = math.tanh %39 : vector<8x32xf32>
    %41 = vector.extract_strided_slice %10 {offsets = [56, 0], sizes = [8, 32], strides = [1, 1]} : vector<64x32xf32> to vector<8x32xf32>
    %cst_15 = arith.constant dense<0.000000e+00> : vector<8x32xf32>
    %42 = tpu.matmul %40, %11, %cst_15 {dimension_numbers = #tpu.dot_dimension_numbers<[1], [0], [0], [1], [0, 0, 1, 1], [], []>} : vector<8x32xf32>, vector<32x32xf32>, vector<8x32xf32> -> vector<8x32xf32>
    %43 = arith.addf %41, %42 : vector<8x32xf32>
    %44 = math.tanh %43 : vector<8x32xf32>
    %c0_16 = arith.constant 0 : index
    %c0_17 = arith.constant 0 : index
    %45 = vector.load %arg4[%c0_16, %c0_17] : memref<32x256xf32, #tpu.memory_space<vmem>>, vector<32x256xf32>
    %cst_18 = arith.constant dense<0.000000e+00> : vector<8x256xf32>
    %46 = tpu.matmul %44, %45, %cst_18 {dimension_numbers = #tpu.dot_dimension_numbers<[1], [0], [0], [1], [0, 0, 1, 1], [], []>} : vector<8x32xf32>, vector<32x256xf32>, vector<8x256xf32> -> vector<8x256xf32>
    %c0_19 = arith.constant 0 : index
    %c0_20 = arith.constant 0 : index
    %47 = vector.load %arg5[%c0_19, %c0_20] : memref<1x256xf32, #tpu.memory_space<vmem>>, vector<1x256xf32>
    %48 = vector.broadcast %47 : vector<1x256xf32> to vector<8x256xf32>
    %49 = arith.addf %46, %48 : vector<8x256xf32>
    %cst_21 = arith.constant 0.000000e+00 : f32
    %50 = vector.broadcast %cst_21 : f32 to vector<8x256xf32>
    %51 = arith.maximumf %49, %50 : vector<8x256xf32>
    %c0_22 = arith.constant 0 : index
    %c0_23 = arith.constant 0 : index
    %52 = vector.load %arg6[%c0_22, %c0_23] : memref<256x128xf32, #tpu.memory_space<vmem>>, vector<256x128xf32>
    %cst_24 = arith.constant dense<0.000000e+00> : vector<8x128xf32>
    %53 = tpu.matmul %51, %52, %cst_24 {dimension_numbers = #tpu.dot_dimension_numbers<[1], [0], [0], [1], [0, 0, 1, 1], [], []>} : vector<8x256xf32>, vector<256x128xf32>, vector<8x128xf32> -> vector<8x128xf32>
    %c0_25 = arith.constant 0 : index
    %c0_26 = arith.constant 0 : index
    %54 = vector.load %arg7[%c0_25, %c0_26] : memref<1x128xf32, #tpu.memory_space<vmem>>, vector<1x128xf32>
    %55 = vector.broadcast %54 : vector<1x128xf32> to vector<8x128xf32>
    %56 = arith.addf %53, %55 : vector<8x128xf32>
    %c0_27 = arith.constant 0 : index
    %c0_28 = arith.constant 0 : index
    %57 = vector.load %arg8[%c0_27, %c0_28] : memref<8x128xf32, #tpu.memory_space<vmem>>, vector<8x128xf32>
    tpu.vector_store %arg8[%c0_27, %c0_28], %56 {strides = array<i32>} : memref<8x128xf32, #tpu.memory_space<vmem>>, vector<8x128xf32>,
    return
  }
}

</mosaic_0001>

<bundles_post_ra>
// kernel: tpu_custom_call.1
= control target key start
LH: loop header
LB: loop body
LE: loop exit
PB: predicated region body
PF: predicated region fallthrough
CT: control target
= control target key end

     0   :  { %13 = vsyncpa [#allocation3], 0  ;;  %s1672_s0 = inlined_call_operand.vmem [shape: s32[64,1], index: 0, kind: input, shape index: {}]   ;;  %s1673_s1 = inlined_call_operand.vmem [shape: f32[128,32], index: 1, kind: input, shape index: {}]   ;;  %s1674_s2 = inlined_call_operand.vmem [shape: f32[32,32], index: 2, kind: input, shape index: {}]   ;;  %s1675_s3 = inlined_call_operand.vmem [shape: f32[1,32], index: 3, kind: input, shape index: {}]   ;;  %s1676_s4 = inlined_call_operand.vmem [shape: f32[32,256], index: 4, kind: input, shape index: {}]   ;;  %s1677_s5 = inlined_call_operand.vmem [shape: f32[1,256], index: 5, kind: input, shape index: {}]   ;;  %s1678_s6 = inlined_call_operand.hbm [shape: f32[256,128], index: 6, kind: input, shape index: {}]   ;;  %s1679_s7 = inlined_call_operand.vmem [shape: f32[1,128], index: 7, kind: input, shape index: {}]   ;;  %s1680_s8 = inlined_call_operand.hbm [shape: f32[8,128], index: 8, kind: output, shape index: {}]  }
   0x1   :  { %14 = vsyncpa [#allocation4], 0  ;;  %s1383_s27 = smov [#allocation2]  }
   0x2   :  { %s32_s28 = sshll.u32 %s1383_s27, 4  ;;  %s33_s28 = int_to_ptr.vmem [resolvable:$true] %s32_s28 }
   0x3   :  { %s1347_s29 = scalar_lea.vmem %s33_s28, 4096  ;;  %p1352_p1 = scmp.lt.s32.totalorder %s33_s28, %s33_s28 }
   0x4   :  { %p1348_p0 = scmp.ne.s32.totalorder %s33_s28, %s1347_s29  ;;  %p1353_p2 = scmp.lt.s32.totalorder %s1347_s29, %s1347_s29 }
   0x6   :  { %p1354_p3 = por %p1353_p2, %p1352_p1 }
   0x8   :  { %p1355_p4 = pnand %p1354_p3, %p1348_p0 }
   0xa   :  { %1358 = shalt.err (!%p1355_p4)
}
   0xb   :  { %s1384_s30 = smov 128   ;;  %s1385_s9 = smov 8  }
   0xc   :  { %38 = dma.hbm_to_vmem [thread:$0]  %s1678_s6, 4096, %s33_s28, [#allocation3], %s1384_s30, %s1384_s30, %s1385_s9  }
   0xd   :  { %1379 = dma.done.wait [#allocation3], 4096  }
   0xe   :  { %1380 = vsyncadd [#allocation3], 4294963200  ;;  %v1386_v0 = vmov 0   ;;  %v1387_v1 = vmov 0.0   ;;  %v44_v2 = vld [vmem:[%s1672_s0] sm:$0xff]  ;;  %v46_v3 = vld [vmem:[%s1672_s0 + $0x10] sm:$0xff]  ;;  %v52_v29 = vlaneseq }
   0xf   :  { %1321 = vset.pattern.permute.xlu0 %v1386_v0  ;;  %1322 = vset.pattern.permute.xlu1 %v1386_v0  ;;  %v45_v4 = vld [vmem:[%s1672_s0 + $0x8] sm:$0xff]  ;;  %v47_v5 = vld [vmem:[%s1672_s0 + $0x18] sm:$0xff]  ;;  %v116_v7 = vld [vmem:[%s1673_s1 + $0x70] sm:$0xff]  ;;  %vm1388_vm0 = vmmov 0   ;;  %v1389_v33 = vmov 1.0   ;;  %vm234_vm8 = vcmask 261120  }
  0x10   :  { %1225 = vmatprep.subr.mxu1 %v1387_v1  ;;  %55 = vperm.xlu0 %1321, %v44_v2   ;;  %v117_v6 = vld [vmem:[%s1673_s1 + $0x78] sm:$0xff]  ;;  %v115_v8 = vld [vmem:[%s1673_s1 + $0x68] sm:$0xff]  ;;  %v48_v9 = vld [vmem:[%s1672_s0 + $0x20] sm:$0xff]  ;;  %v53_v30 = vand.u32 127, %v52_v29  ;;  %s1390_s15 = smov [#allocation5]  }
  0x11   :  { %61 = vperm.xlu1 %1322, %v46_v3   ;;  %1181 = vmatprep.subr.mxu0 %v117_v6  ;;  %v49_v10 = vld [vmem:[%s1672_s0 + $0x28] sm:$0xff]  ;;  %v1472_v11 = vld [vmem:[%s1674_s2 + $0x18] sm:$0xff]  ;;  %v114_v12 = vld [vmem:[%s1673_s1 + $0x60] sm:$0xff]  ;;  %s1047_s16 = sshll.u32 %s1390_s15, 4  ;;  %s1048_s16 = int_to_ptr.vmem [resolvable:$true] %s1047_s16 }
  0x12   :  { %1233 = vmatprep.mubr.msk.f32.mxu1 %vm1388_vm0, %v1387_v1  ;;  %1182 = vmatpush3.msra.mxu0 %v117_v6  ;;  %v1481_v13 = vld [vmem:[%s1674_s2 + $0x10] sm:$0xff]  ;;  %v113_v15 = vld [vmem:[%s1673_s1 + $0x58] sm:$0xff]  ;;  %v1494_v16 = vld [vmem:[%s1674_s2 + $0x8] sm:$0xff]  ;;  %p1364_p6 = scmp.lt.s32.totalorder %s1048_s16, %s1048_s16 }
  0x13   :  { %1183 = vmatprep.subr.mxu0 %v116_v7  ;;  %1226 = vmatpush3.msra.mxu1 %v1472_v11  ;;  %v50_v14 = vld [vmem:[%s1672_s0 + $0x30] sm:$0xff]  ;;  %v1503_v18 = vld [vmem:[%s1674_s2] sm:$0xff]  ;;  %v111_v19 = vld [vmem:[%s1673_s1 + $0x48] sm:$0xff] }
  0x14   :  { %58 = vperm.xlu0 %1321, %v45_v4   ;;  %1184 = vmatpush3.msra.mxu0 %v116_v7  ;;  %v112_v17 = vld [vmem:[%s1673_s1 + $0x50] sm:$0xff]  ;;  %v110_v20 = vld [vmem:[%s1673_s1 + $0x40] sm:$0xff]  ;;  %v109_v21 = vld [vmem:[%s1673_s1 + $0x38] sm:$0xff] }
  0x15   :  { %64 = vperm.xlu1 %1322, %v47_v5   ;;  %1185 = vmatprep.subr.mxu0 %v115_v8  ;;  %v108_v22 = vld [vmem:[%s1673_s1 + $0x30] sm:$0xff]  ;;  %v107_v23 = vld [vmem:[%s1673_s1 + $0x28] sm:$0xff]  ;;  %v106_v24 = vld [vmem:[%s1673_s1 + $0x20] sm:$0xff] }
  0x16   :  { %1186 = vmatpush3.msra.mxu0 %v115_v8  ;;  %1227 = vmatprep.subr.mxu1 %v1387_v1  ;;  %v105_v25 = vld [vmem:[%s1673_s1 + $0x18] sm:$0xff]  ;;  %v104_v26 = vld [vmem:[%s1673_s1 + $0x10] sm:$0xff]  ;;  %v103_v27 = vld [vmem:[%s1673_s1 + $0x8] sm:$0xff] }
  0x17   :  { %1187 = vmatprep.subr.mxu0 %v114_v12  ;;  %1228 = vmatpush3.msra.mxu1 %v1481_v13  ;;  %v102_v28 = vld [vmem:[%s1673_s1] sm:$0xff]  ;;  %v51_v41 = vld [vmem:[%s1672_s0 + $0x38] sm:$0xff] }
  0x18   :  { %67 = vperm.xlu0 %1321, %v48_v9   ;;  %1188 = vmatpush3.msra.mxu0 %v114_v12  ;;  %v1557_v43 = vld [vmem:[%s1675_s3] ss:$0 sm:$0xff] }
  0x19   :  { %70 = vperm.xlu1 %1322, %v49_v10   ;;  %1229 = vmatprep.subr.mxu1 %v1387_v1 }
  0x1a   :  { %1189 = vmatprep.subr.mxu0 %v113_v15  ;;  %1230 = vmatpush3.msra.mxu1 %v1494_v16 }
  0x1b   :  { %1190 = vmatpush3.msra.mxu0 %v113_v15  ;;  %1231 = vmatprep.subr.mxu1 %v1387_v1 }
  0x1c   :  { %73 = vperm.xlu0 %1321, %v50_v14   ;;  %1191 = vmatprep.subr.mxu0 %v112_v17 }
  0x1d   :  { %1192 = vmatpush3.msra.mxu0 %v112_v17  ;;  %1232 = vmatpush3.msra.mxu1 %v1503_v18 }
  0x1e   :  { %1193 = vmatprep.subr.mxu0 %v111_v19  ;;  %1234 = vmatmul.mubr.f32.vlgmr.msra.gmra.mxu1 %v1387_v1 }
  0x1f   :  { %1194 = vmatpush3.msra.mxu0 %v111_v19  ;;  %1236 = vmatprep.subr.mxu1 %v1387_v1 }
  0x20   :  { %1195 = vmatprep.subr.mxu0 %v110_v20  ;;  %1237 = vmatpush3.msra.mxu1 %v1472_v11 }
  0x21   :  { %1196 = vmatpush3.msra.mxu0 %v110_v20  ;;  %1238 = vmatprep.subr.mxu1 %v1387_v1 }
  0x22   :  { %1197 = vmatprep.subr.mxu0 %v109_v21  ;;  %1239 = vmatpush3.msra.mxu1 %v1481_v13 }
  0x23   :  { %1198 = vmatpush3.msra.mxu0 %v109_v21  ;;  %1240 = vmatprep.subr.mxu1 %v1387_v1 }
  0x24   :  { %1199 = vmatprep.subr.mxu0 %v108_v22  ;;  %1241 = vmatpush3.msra.mxu1 %v1494_v16 }
  0x25   :  { %1200 = vmatpush3.msra.mxu0 %v108_v22  ;;  %1242 = vmatprep.subr.mxu1 %v1387_v1 }
  0x26   :  { %1201 = vmatprep.subr.mxu0 %v107_v23  ;;  %1243 = vmatpush3.msra.mxu1 %v1503_v18 }
  0x27   :  { %1202 = vmatpush3.msra.mxu0 %v107_v23  ;;  %1244 = vmatprep.mubr.msk.f32.mxu1 %vm1388_vm0, %v1387_v1 }
  0x28   :  { %1203 = vmatprep.subr.mxu0 %v106_v24  ;;  %1247 = vmatprep.subr.mxu1 %v1387_v1 }
  0x29   :  { %1204 = vmatpush3.msra.mxu0 %v106_v24  ;;  %76 = vperm.xlu1 %1322, %v51_v41   ;;  %v941_v41 = vld [vmem:[#allocation2 + $0x50] sm:$0xff] }
  0x2a   :  { %1205 = vmatprep.subr.mxu0 %v105_v25 }
  0x2b   :  { %1206 = vmatpush3.msra.mxu0 %v105_v25  ;;  %v839_v25 = vld [vmem:[%s1676_s4 + $0x20] sm:$0xff] }
  0x2c   :  { %1207 = vmatprep.subr.mxu0 %v104_v26 }
  0x2d   :  { %1208 = vmatpush3.msra.mxu0 %v104_v26  ;;  %v837_v26 = vld [vmem:[%s1676_s4 + $0x10] sm:$0xff] }
  0x2e   :  { %1209 = vmatprep.subr.mxu0 %v103_v27 }
  0x2f   :  { %1210 = vmatpush3.msra.mxu0 %v103_v27  ;;  %v836_v27 = vld [vmem:[%s1676_s4 + $0x8] sm:$0xff] }
  0x30   :  { %1211 = vmatprep.subr.mxu0 %v102_v28 }
  0x31   :  { %1212 = vmatpush3.msra.mxu0 %v102_v28  ;;  %v835_v28 = vld [vmem:[%s1676_s4] sm:$0xff] }
  0x8b   :  { %v56_v31 = vpop.permute.xlu0 %55 }
  0x8c   :  { %v62_v32 = vpop.permute.xlu1 %61  ;;  %vm78_vm1 = vcmp.eq.s32.totalorder %v56_v31, %v53_v30  ;;  %v946_v31 = vld [vmem:[#allocation2 + $0x78] sm:$0xff] }
  0x8d   :  { %1213 = vmatprep.mubr.msk.f32.mxu0 %vm78_vm1, %v1389_v33  ;;  %vm80_vm2 = vcmp.eq.s32.totalorder %v62_v32, %v53_v30  ;;  %v961_v32 = vld [vmem:[#allocation2 + $0xf0] sm:$0xff] }
  0x8f   :  { %v59_v34 = vpop.permute.xlu0 %58 }
  0x90   :  { %v65_v35 = vpop.permute.xlu1 %64  ;;  %vm79_vm3 = vcmp.eq.s32.totalorder %v59_v34, %v53_v30  ;;  %v960_v34 = vld [vmem:[#allocation2 + $0xe8] sm:$0xff] }
  0x91   :  { %1214 = vmatmul.mubr.msk.f32.vlgmr.msra.gmra.mxu0 %vm79_vm3, %v1389_v33  ;;  %vm81_vm4 = vcmp.eq.s32.totalorder %v65_v35, %v53_v30  ;;  %v944_v35 = vld [vmem:[#allocation2 + $0x68] sm:$0xff] }
  0x92   :  { %1216 = vmatprep.mubr.msk.f32.mxu0 %vm80_vm2, %v1389_v33 }
  0x93   :  { %v68_v36 = vpop.permute.xlu0 %67 }
  0x94   :  { %v71_v37 = vpop.permute.xlu1 %70  ;;  %vm82_vm5 = vcmp.eq.s32.totalorder %v68_v36, %v53_v30  ;;  %v959_v36 = vld [vmem:[#allocation2 + $0xe0] sm:$0xff] }
  0x95   :  { %1217 = vmatmul.mubr.msk.f32.gmra.mxu0 %vm81_vm4, %v1389_v33  ;;  %vm83_vm6 = vcmp.eq.s32.totalorder %v71_v37, %v53_v30  ;;  %v943_v37 = vld [vmem:[#allocation2 + $0x60] sm:$0xff] }
  0x96   :  { %1219 = vmatprep.mubr.msk.f32.mxu0 %vm82_vm5, %v1389_v33 }
  0x97   :  { %v74_v38 = vpop.permute.xlu0 %73 }
  0x98   :  { %vm84_vm7 = vcmp.eq.s32.totalorder %v74_v38, %v53_v30  ;;  %v958_v38 = vld [vmem:[#allocation2 + $0xd8] sm:$0xff] }
  0x99   :  { %1220 = vmatmul.mubr.msk.f32.gmra.mxu0 %vm83_vm6, %v1389_v33 }
  0x9a   :  { %1222 = vmatprep.mubr.msk.f32.mxu0 %vm84_vm7, %v1389_v33 }
  0xa4   :  { %v77_v48 = vpop.permute.xlu1 %76 }
  0xa5   :  { %vm85_vm9 = vcmp.eq.s32.totalorder %v77_v48, %v53_v30  ;;  %v962_v30 = vld [vmem:[#allocation2 + $0xf8] sm:$0xff] }
  0xa6   :  { %1223 = vmatmul.mubr.msk.f32.gmra.mxu0 %vm85_vm9, %v1389_v33  ;;  %1146 = vmatprep.subr.mxu0 %v962_v30  ;;  %v945_v33 = vld [vmem:[#allocation2 + $0x70] sm:$0xff]  ;;  %v938_v48 = vld [vmem:[#allocation2 + $0x38] sm:$0xff] }
  0xa7   :  { %1147 = vmatpush3.msra.mxu0 %v946_v31 }
  0xa8   :  { %1148 = vmatprep.subr.mxu0 %v961_v32 }
  0xa9   :  { %1149 = vmatpush3.msra.mxu0 %v945_v33 }
  0xaa   :  { %1150 = vmatprep.subr.mxu0 %v960_v34 }
  0xab   :  { %1151 = vmatpush3.msra.mxu0 %v944_v35 }
  0xac   :  { %1152 = vmatprep.subr.mxu0 %v959_v36 }
  0xad   :  { %1153 = vmatpush3.msra.mxu0 %v943_v37 }
  0xae   :  { %1154 = vmatprep.subr.mxu0 %v958_v38 }
  0xde   :  { %v304_v39 = vpop.f32.mrf.mxu1 }
  0xe0   :  { %v1235_v40 = vpop.f32.mrf.mxu1 }
  0xe1   :  { %v957_v40 = vld [vmem:[#allocation2 + $0xd0] sm:$0xff] }
 0x151   :  { %v1215_v42 = vpop.f32.mrf.mxu0 }
 0x152   :  { %v197_v49 = vadd.f32 %v1215_v42, %v1557_v43  ;;  %v956_v42 = vld [vmem:[#allocation2 + $0xc8] sm:$0xff] }
 0x153   :  { %v191_v44 = vpop.f32.mrf.mxu0 }
 0x154   :  { %v192_v45 = vadd.f32 %v1557_v43, %v191_v44  ;;  %v940_v44 = vld [vmem:[#allocation2 + $0x48] sm:$0xff] }
 0x155   :  { %v1218_v54 = vpop.f32.mrf.mxu0 }
 0x156   :  { %v308_v46 = vadd.f32 %v304_v39, %v192_v45  ;;  %v207_v61 = vadd.f32 %v1218_v54, %v1557_v43  ;;  %v942_v39 = vld [vmem:[#allocation2 + $0x58] sm:$0xff]  ;;  %v955_v45 = vld [vmem:[#allocation2 + $0xc0] sm:$0xff] }
 0x157   :  { %v201_v55 = vpop.f32.mrf.mxu0  ;;  %1155 = vmatpush3.msra.mxu0 %v942_v39  ;;  %v935_v54 = vld [vmem:[#allocation2 + $0x20] sm:$0xff] }
 0x158   :  { %1323 = vtanh.f32 %v308_v46  ;;  %v202_v56 = vadd.f32 %v1557_v43, %v201_v55  ;;  %1156 = vmatprep.subr.mxu0 %v957_v40  ;;  %v939_v46 = vld [vmem:[#allocation2 + $0x40] sm:$0xff] }
 0x159   :  { %v1221_v3 = vpop.f32.mrf.mxu0  ;;  %1157 = vmatpush3.msra.mxu0 %v941_v41 }
 0x15a   :  { %v217_v10 = vadd.f32 %v1221_v3, %v1557_v43  ;;  %1158 = vmatprep.subr.mxu0 %v956_v42  ;;  %v931_v3 = vld [vmem:[#allocation2] sm:$0xff] }
 0x15b   :  { %v211_v4 = vpop.f32.mrf.mxu0  ;;  %1159 = vmatpush3.msra.mxu0 %v940_v44 }
 0x15c   :  { %v212_v5 = vadd.f32 %v1557_v43, %v211_v4  ;;  %1160 = vmatprep.subr.mxu0 %v955_v45  ;;  %v846_v4 = vshrl.u32 %v52_v29, 7  ;;  %v1081_v29 = vld [vmem:[%s1679_s7] ss:$0 sm:$0xff] }
 0x15d   :  { %1161 = vmatpush3.msra.mxu0 %v939_v46 }
 0x165   :  { %v1324_v47 = vpop.eup %1323 }
 0x166   :  { %1245 = vmatmul.mubr.msk.f32.vlgmr.msra.gmra.mxu1 %vm234_vm8, %v1324_v47  ;;  %v1630_v19 = vpop.f32.mrf.mxu0  ;;  %v954_v47 = vld [vmem:[#allocation2 + $0xb8] sm:$0xff] }
 0x167   :  { %1248 = vmatpush3.msra.mxu1 %v1472_v11  ;;  %1255 = vmatprep.mubr.msk.f32.mxu1 %vm1388_vm0, %v1387_v1  ;;  %v227_v55 = vadd.f32 %v1630_v19, %v1557_v43 }
 0x168   :  { %1249 = vmatprep.subr.mxu1 %v1387_v1  ;;  %v221_v20 = vpop.f32.mrf.mxu0  ;;  %1162 = vmatprep.subr.mxu0 %v954_v47 }
 0x169   :  { %1250 = vmatpush3.msra.mxu1 %v1481_v13  ;;  %1163 = vmatpush3.msra.mxu0 %v938_v48 }
 0x16a   :  { %1251 = vmatprep.subr.mxu1 %v1387_v1 }
 0x16b   :  { %1252 = vmatpush3.msra.mxu1 %v1494_v16 }
 0x16c   :  { %1253 = vmatprep.subr.mxu1 %v1387_v1 }
 0x16d   :  { %1254 = vmatpush3.msra.mxu1 %v1503_v18 }
 0x16e   :  { %1258 = vmatprep.subr.mxu1 %v1387_v1 }
 0x226   :  { %v379_v50 = vpop.f32.mrf.mxu1 }
 0x227   :  { %v383_v51 = vadd.f32 %v379_v50, %v197_v49  ;;  %v953_v49 = vld [vmem:[#allocation2 + $0xb0] sm:$0xff] }
 0x228   :  { %v1246_v52 = vpop.f32.mrf.mxu1  ;;  %v937_v50 = vld [vmem:[#allocation2 + $0x30] sm:$0xff]  ;;  %1164 = vmatprep.subr.mxu0 %v953_v49 }
 0x229   :  { %1325 = vtanh.f32 %v383_v51  ;;  %v952_v51 = vld [vmem:[#allocation2 + $0xa8] sm:$0xff]  ;;  %1165 = vmatpush3.msra.mxu0 %v937_v50 }
 0x22a   :  { %v936_v52 = vld [vmem:[#allocation2 + $0x28] sm:$0xff]  ;;  %1166 = vmatprep.subr.mxu0 %v952_v51 }
 0x22b   :  { %1167 = vmatpush3.msra.mxu0 %v936_v52 }
 0x236   :  { %v1326_v53 = vpop.eup %1325 }
 0x237   :  { %1256 = vmatmul.mubr.msk.f32.vlgmr.msra.gmra.mxu1 %vm234_vm8, %v1326_v53  ;;  %v951_v53 = vld [vmem:[#allocation2 + $0xa0] sm:$0xff] }
 0x238   :  { %1259 = vmatpush3.msra.mxu1 %v1472_v11  ;;  %1266 = vmatprep.mubr.msk.f32.mxu1 %vm1388_vm0, %v1387_v1 }
 0x239   :  { %1260 = vmatprep.subr.mxu1 %v1387_v1  ;;  %1168 = vmatprep.subr.mxu0 %v951_v53 }
 0x23a   :  { %1261 = vmatpush3.msra.mxu1 %v1481_v13  ;;  %1169 = vmatpush3.msra.mxu0 %v935_v54 }
 0x23b   :  { %1262 = vmatprep.subr.mxu1 %v1387_v1 }
 0x23c   :  { %1263 = vmatpush3.msra.mxu1 %v1494_v16 }
 0x23d   :  { %1264 = vmatprep.subr.mxu1 %v1387_v1 }
 0x23e   :  { %1265 = vmatpush3.msra.mxu1 %v1503_v18 }
 0x23f   :  { %1269 = vmatprep.subr.mxu1 %v1387_v1 }
 0x2f7   :  { %v454_v57 = vpop.f32.mrf.mxu1 }
 0x2f8   :  { %v458_v58 = vadd.f32 %v454_v57, %v202_v56 }
 0x2f9   :  { %v1257_v59 = vpop.f32.mrf.mxu1 }
 0x2fa   :  { %1327 = vtanh.f32 %v458_v58 }
 0x307   :  { %v1328_v60 = vpop.eup %1327 }
 0x308   :  { %1267 = vmatmul.mubr.msk.f32.vlgmr.msra.gmra.mxu1 %vm234_vm8, %v1328_v60  ;;  %v950_v60 = vld [vmem:[#allocation2 + $0x98] sm:$0xff] }
 0x309   :  { %1270 = vmatpush3.msra.mxu1 %v1472_v11  ;;  %1277 = vmatprep.mubr.msk.f32.mxu1 %vm1388_vm0, %v1387_v1 }
 0x30a   :  { %1271 = vmatprep.subr.mxu1 %v1387_v1  ;;  %1170 = vmatprep.subr.mxu0 %v950_v60 }
 0x30b   :  { %1272 = vmatpush3.msra.mxu1 %v1481_v13 }
 0x30c   :  { %1273 = vmatprep.subr.mxu1 %v1387_v1 }
 0x30d   :  { %1274 = vmatpush3.msra.mxu1 %v1494_v16 }
 0x30e   :  { %1275 = vmatprep.subr.mxu1 %v1387_v1 }
 0x30f   :  { %1276 = vmatpush3.msra.mxu1 %v1503_v18 }
 0x310   :  { %1280 = vmatprep.subr.mxu1 %v1387_v1 }
 0x3c8   :  { %v529_v62 = vpop.f32.mrf.mxu1 }
 0x3c9   :  { %v533_v63 = vadd.f32 %v529_v62, %v207_v61  ;;  %v934_v61 = vld [vmem:[#allocation2 + $0x18] sm:$0xff]  ;;  %v949_v62 = vld [vmem:[#allocation2 + $0x90] sm:$0xff] }
 0x3ca   :  { %v1268_v0 = vpop.f32.mrf.mxu1  ;;  %1171 = vmatpush3.msra.mxu0 %v934_v61 }
 0x3cb   :  { %1329 = vtanh.f32 %v533_v63  ;;  %1172 = vmatprep.subr.mxu0 %v949_v62  ;;  %v933_v63 = vld [vmem:[#allocation2 + $0x10] sm:$0xff]  ;;  %v948_v0 = vld [vmem:[#allocation2 + $0x88] sm:$0xff] }
 0x3cc   :  { %1173 = vmatpush3.msra.mxu0 %v933_v63 }
 0x3cd   :  { %1174 = vmatprep.subr.mxu0 %v948_v0 }
 0x3d8   :  { %v1330_v2 = vpop.eup %1329 }
 0x3d9   :  { %1278 = vmatmul.mubr.msk.f32.vlgmr.msra.gmra.mxu1 %vm234_vm8, %v1330_v2  ;;  %v932_v2 = vld [vmem:[#allocation2 + $0x8] sm:$0xff] }
 0x3da   :  { %1281 = vmatpush3.msra.mxu1 %v1472_v11  ;;  %1288 = vmatprep.mubr.msk.f32.mxu1 %vm1388_vm0, %v1387_v1 }
 0x3db   :  { %1282 = vmatprep.subr.mxu1 %v1387_v1  ;;  %1175 = vmatpush3.msra.mxu0 %v932_v2 }
 0x3dc   :  { %1283 = vmatpush3.msra.mxu1 %v1481_v13 }
 0x3dd   :  { %1284 = vmatprep.subr.mxu1 %v1387_v1 }
 0x3de   :  { %1285 = vmatpush3.msra.mxu1 %v1494_v16 }
 0x3df   :  { %1286 = vmatprep.subr.mxu1 %v1387_v1 }
 0x3e0   :  { %1287 = vmatpush3.msra.mxu1 %v1503_v18 }
 0x3e1   :  { %1291 = vmatprep.subr.mxu1 %v1387_v1 }
 0x499   :  { %v604_v6 = vpop.f32.mrf.mxu1 }
 0x49a   :  { %v608_v7 = vadd.f32 %v604_v6, %v212_v5  ;;  %v847_v5 = vsub.s32 0, %v846_v4  ;;  %v843_v6 = vld [vmem:[%s1677_s5] sm:$0x3]  ;;  %s1359_s5 = scalar_lea.vmem %s1048_s16, 128 }
 0x49b   :  { %v1279_v8 = vpop.f32.mrf.mxu1  ;;  %p1360_p5 = scmp.ne.s32.totalorder %s1048_s16, %s1359_s5  ;;  %p1365_p7 = scmp.lt.s32.totalorder %s1359_s5, %s1359_s5 }
 0x49c   :  { %1331 = vtanh.f32 %v608_v7  ;;  %v851_v7 = vsub.s32 1, %v846_v4  ;;  %v848_v8 = vrot.slane %v843_v6, %v847_v5 }
 0x49d   :  { %p1366_p8 = por %p1365_p7, %p1364_p6 }
 0x49f   :  { %p1367_p9 = pnand %p1366_p8, %p1360_p5 }
 0x4a9   :  { %v1332_v9 = vpop.eup %1331 }
 0x4aa   :  { %1289 = vmatmul.mubr.msk.f32.vlgmr.msra.gmra.mxu1 %vm234_vm8, %v1332_v9  ;;  %v852_v9 = vrot.slane %v843_v6, %v851_v7 }
 0x4ab   :  { %1292 = vmatpush3.msra.mxu1 %v1472_v11  ;;  %1299 = vmatprep.mubr.msk.f32.mxu1 %vm1388_vm0, %v1387_v1 }
 0x4ac   :  { %1293 = vmatprep.subr.mxu1 %v1387_v1 }
 0x4ad   :  { %1294 = vmatpush3.msra.mxu1 %v1481_v13 }
 0x4ae   :  { %1295 = vmatprep.subr.mxu1 %v1387_v1 }
 0x4af   :  { %1296 = vmatpush3.msra.mxu1 %v1494_v16 }
 0x4b0   :  { %1297 = vmatprep.subr.mxu1 %v1387_v1 }
 0x4b1   :  { %1298 = vmatpush3.msra.mxu1 %v1503_v18 }
 0x4b2   :  { %1302 = vmatprep.subr.mxu1 %v1387_v1 }
 0x56a   :  { %v679_v12 = vpop.f32.mrf.mxu1 }
 0x56b   :  { %v683_v14 = vadd.f32 %v679_v12, %v217_v10 }
 0x56c   :  { %v1290_v15 = vpop.f32.mrf.mxu1 }
 0x56d   :  { %1333 = vtanh.f32 %v683_v14 }
 0x57a   :  { %v1334_v17 = vpop.eup %1333 }
 0x57b   :  { %1300 = vmatmul.mubr.msk.f32.vlgmr.msra.gmra.mxu1 %vm234_vm8, %v1334_v17 }
 0x57c   :  { %1303 = vmatpush3.msra.mxu1 %v1472_v11  ;;  %1310 = vmatprep.mubr.msk.f32.mxu1 %vm1388_vm0, %v1387_v1  ;;  %v222_v11 = vadd.f32 %v1557_v43, %v221_v20  ;;  %v947_v43 = vld [vmem:[#allocation2 + $0x80] sm:$0xff] }
 0x57d   :  { %1304 = vmatprep.subr.mxu1 %v1387_v1  ;;  %1176 = vmatprep.subr.mxu0 %v947_v43 }
 0x57e   :  { %1305 = vmatpush3.msra.mxu1 %v1481_v13  ;;  %v842_v13 = vld [vmem:[%s1676_s4 + $0x38] sm:$0xff]  ;;  %1177 = vmatpush3.msra.mxu0 %v931_v3 }
 0x57f   :  { %1306 = vmatprep.subr.mxu1 %v1387_v1 }
 0x580   :  { %1307 = vmatpush3.msra.mxu1 %v1494_v16  ;;  %v841_v16 = vld [vmem:[%s1676_s4 + $0x30] sm:$0xff] }
 0x581   :  { %1308 = vmatprep.subr.mxu1 %v1387_v1 }
 0x582   :  { %1309 = vmatpush3.msra.mxu1 %v1503_v18  ;;  %v840_v18 = vld [vmem:[%s1676_s4 + $0x28] sm:$0xff] }
 0x583   :  { %882 = vmatprep.subr.mxu1 %v842_v13 }
 0x63b   :  { %v754_v21 = vpop.f32.mrf.mxu1 }
 0x63c   :  { %v758_v22 = vadd.f32 %v754_v21, %v222_v11 }
 0x63d   :  { %v1301_v23 = vpop.f32.mrf.mxu1 }
 0x63e   :  { %1335 = vtanh.f32 %v758_v22 }
 0x64b   :  { %v1336_v24 = vpop.eup %1335 }
 0x64c   :  { %1311 = vmatmul.mubr.msk.f32.vlgmr.msra.gmra.mxu1 %vm234_vm8, %v1336_v24 }
 0x64d   :  { %922 = vmatprep.mubr.f32.mxu1 %v1387_v1  ;;  %883 = vmatpush1.msra.mxu1 %v841_v16  ;;  %v838_v1 = vld [vmem:[%s1676_s4 + $0x18] sm:$0xff] }
 0x64e   :  { %884 = vmatprep.subr.mxu1 %v840_v18 }
 0x64f   :  { %885 = vmatpush1.msra.mxu1 %v839_v25 }
 0x650   :  { %886 = vmatprep.subr.mxu1 %v838_v1 }
 0x651   :  { %887 = vmatpush1.msra.mxu1 %v837_v26 }
 0x652   :  { %888 = vmatprep.subr.mxu1 %v836_v27 }
 0x653   :  { %889 = vmatpush1.msra.mxu1 %v835_v28 }
 0x70c   :  { %v829_v56 = vpop.f32.mrf.mxu1 }
 0x70d   :  { %v833_v57 = vadd.f32 %v829_v56, %v227_v55 }
 0x70e   :  { %v1312_v58 = vpop.f32.mrf.mxu1 }
 0x70f   :  { %1337 = vtanh.f32 %v833_v57 }
 0x71c   :  { %v1338_v59 = vpop.eup %1337 }
 0x71d   :  { %1080 = vmatmul.mubr.msk.f32.vlgmr.msra.gmra.mxu1 %vm234_vm8, %v1338_v59 }
 0x7dd   :  { %v924_v10 = vpop.f32.mrf.mxu1 }
 0x7de   :  { %v925_v12 = vadd.f32 %v924_v10, %v848_v8 }
 0x7df   :  { %v926_v14 = vpop.f32.mrf.mxu1 }
 0x7e0   :  { %v927_v15 = vadd.f32 %v926_v14, %v852_v9  ;;  %v929_v19 = vmax.f32 %v925_v12, 0.0 }
 0x7e2   :  { %v930_v17 = vmax.f32 %v927_v15, 0.0 }
 0x7e4   :  { %1034 = vmatprep.mubr.f32.mxu0 %v930_v17 }
 0x7e5   :  { %1035 = vmatmul.mubr.f32.vlgmr.msra.gmra.mxu0 %v929_v19 }
 0x8a5   :  { %v1178_v20 = vpop.f32.mrf.mxu0 }
 0x8a7   :  { %v1179_v11 = vpop.f32.mrf.mxu0 }
 0x8a8   :  { %v1180_v21 = vadd.f32 %v1179_v11, %v1178_v20 }
 0x8aa   :  { %v1037_v22 = vadd.f32 %v1180_v21, %v1081_v29 }
 0x8ac   :  { %1040 = vst [vmem:[#allocation5] sm:$0xff] %v1037_v22 }
 0x8ad   :  { %1370 = shalt.err (!%p1367_p9)
}
 0x8ae   :  { %1050 = dma.vmem_to_hbm [thread:$0]  %s1048_s16, 128, %s1680_s8, [#allocation4]  }
 0x8af   :  { %1381 = dma.done.wait [#allocation4], 128  }
 0x8b0   :  { %1382 = vsyncadd [#allocation4], 4294967168 }
 0x8b1   :  { %1054 = vsyncpa [#allocation3], 1 }
 0x8b2   :  { %1055 = vsyncpa [#allocation4], 1 }

</bundles_post_ra>
